<compile_context>
chip_gen: v7x
topology: tpu7x:2x2x1
jax: 0.10.0
libtpu: 0.0.40
codegen_flags: <defaults>
</compile_context>

<pallas_src>
import numpy as np

import jax
import jax.numpy as jnp
from jax import lax
from jax.experimental import pallas as pl
from jax.experimental.pallas import tpu as pltpu


def _round_up(a: int, b: int) -> int:
    return ((a + b - 1) // b) * b


def _make_kernel(scale, t_actual, t_pad, compute_dtype, approx_recip):
    # dot_general dimension numbers (no transposes materialized).
    nn_dims = (((1,), (0,)), ((), ()))   # A @ B
    nt_dims = (((1,), (1,)), ((), ()))   # A @ B.T (contract last dims)

    def kernel(xq_ref, x_ref, wq_ref, wk_ref, wv_ref, o_ref):
        # Projections: compute_dtype (bf16 by default) MXU operands,
        # f32 accumulation via preferred_element_type.
        q = lax.dot_general(xq_ref[...], wq_ref[...], nn_dims,
                            preferred_element_type=jnp.float32)
        k = lax.dot_general(x_ref[...], wk_ref[...], nn_dims,
                            preferred_element_type=jnp.float32)
        v = lax.dot_general(x_ref[...], wv_ref[...], nn_dims,
                            preferred_element_type=jnp.float32)

        # Fold 1/sqrt(d_k) into the (block_q, d_out) query tile rather than
        # dividing the (block_q, T) score matrix.
        q = q * scale

        # attn_scores = Q @ K^T without an explicit transpose (contract last
        # dims); bf16 operands, f32 accumulator.
        s = lax.dot_general(q.astype(compute_dtype), k.astype(compute_dtype),
                            nt_dims, preferred_element_type=jnp.float32)

        # Mask padded key positions so they do not pollute the softmax.
        if t_pad > t_actual:
            kpos = lax.broadcasted_iota(jnp.int32, s.shape, 1)
            s = jnp.where(kpos < t_actual, s, -jnp.inf)

        # Numerically-stable softmax, all elementwise math in f32 (v5e-safe);
        # the divide is replaced by an EUP reciprocal + VPU multiply.
        m = jnp.max(s, axis=-1, keepdims=True)
        p = jnp.exp(s - m)
        l = jnp.sum(p, axis=-1, keepdims=True)
        attn = p * pl.reciprocal(l, approx=approx_recip)

        # context = attn_weights @ V (bf16 operands, f32 accumulator).
        ctx = lax.dot_general(attn.astype(compute_dtype),
                              v.astype(compute_dtype),
                              nn_dims, preferred_element_type=jnp.float32)
        o_ref[...] = ctx.astype(o_ref.dtype)

    return kernel


def self_attention_v1(x, w_query, w_key, w_value, *,
                      compute_dtype=jnp.bfloat16, approx_recip=None):
    T, d_in = x.shape
    d_out = w_query.shape[1]
    d_k = d_out  # scaling uses the REAL head dim (matches the PyTorch module)

    if approx_recip is None:
        # Keep the f32 path bit-faithful; use the cheap EUP approx otherwise.
        approx_recip = np.dtype(compute_dtype) != np.dtype(jnp.float32)

    # Pad everything to the (8, 128) vreg grid: lane-dense loads and an
    # unmasked, lane-dense output store.
    block_q = min(128, _round_up(T, 8))
    t_pad = _round_up(T, block_q)
    d_in_pad = _round_up(d_in, 128)
    d_out_pad = _round_up(d_out, 128)

    x_p = jnp.pad(x, ((0, t_pad - T), (0, d_in_pad - d_in))).astype(compute_dtype)
    wq_p = jnp.pad(w_query, ((0, d_in_pad - d_in), (0, d_out_pad - d_out))).astype(compute_dtype)
    wk_p = jnp.pad(w_key, ((0, d_in_pad - d_in), (0, d_out_pad - d_out))).astype(compute_dtype)
    wv_p = jnp.pad(w_value, ((0, d_in_pad - d_in), (0, d_out_pad - d_out))).astype(compute_dtype)

    kernel = _make_kernel(1.0 / (d_k ** 0.5), T, t_pad, compute_dtype, approx_recip)

    grid = (t_pad // block_q,)
    flops = 2 * (3 * t_pad * d_in_pad * d_out_pad + 2 * t_pad * t_pad * d_out_pad)
    bytes_accessed = ((2 * x_p.size + wq_p.size + wk_p.size + wv_p.size)
                      * x_p.dtype.itemsize + t_pad * d_out_pad * 4)

    out_p = pl.pallas_call(
        kernel,
        out_shape=jax.ShapeDtypeStruct((t_pad, d_out_pad), jnp.float32),
        grid=grid,
        in_specs=[
            pl.BlockSpec((block_q, d_in_pad), lambda i: (i, 0)),    # x rows -> Q block
            pl.BlockSpec((t_pad, d_in_pad), lambda i: (0, 0)),      # full x -> K/V
            pl.BlockSpec((d_in_pad, d_out_pad), lambda i: (0, 0)),  # W_query
            pl.BlockSpec((d_in_pad, d_out_pad), lambda i: (0, 0)),  # W_key
            pl.BlockSpec((d_in_pad, d_out_pad), lambda i: (0, 0)),  # W_value
        ],
        out_specs=pl.BlockSpec((block_q, d_out_pad), lambda i: (i, 0)),
        compiler_params=pltpu.CompilerParams(
            dimension_semantics=("parallel",)),
        cost_estimate=pl.CostEstimate(flops=flops,
                                      transcendentals=t_pad * t_pad,
                                      bytes_accessed=bytes_accessed),
    )(x_p, x_p, wq_p, wk_p, wv_p)

    # Slice the padding back off.
    return out_p[:T, :d_out]


def self_attention_v1_ref(x, w_query, w_key, w_value):
    """Pure-JAX f32 reference mirroring the PyTorch forward."""
    key = x @ w_key
    query = x @ w_query
    value = x @ w_value
    attn_scores = query @ key.T
    d_k = key.shape[-1]
    attn_weights = jax.nn.softmax(attn_scores / d_k ** 0.5, axis=-1)
    return attn_weights @ value


if __name__ == "__main__":
    # Shapes consistent with the module's example: T=6 tokens, d_in=3, d_out=2.
    T, d_in, d_out = 6, 3, 2

    # The exact `inputs` tensor from the spec.
    x = jnp.array([[0.43, 0.15, 0.89],
                   [0.55, 0.87, 0.66],
                   [0.57, 0.85, 0.64],
                   [0.22, 0.58, 0.33],
                   [0.77, 0.25, 0.10],
                   [0.05, 0.80, 0.55]], dtype=jnp.float32)

    root = jax.random.PRNGKey(0)
    kq, kk, kv = jax.random.split(root, 3)
    w_query = jax.random.normal(kq, (d_in, d_out), dtype=jnp.float32)
    w_key = jax.random.normal(kk, (d_in, d_out), dtype=jnp.float32)
    w_value = jax.random.normal(kv, (d_in, d_out), dtype=jnp.float32)

    ref = self_attention_v1_ref(x, w_query, w_key, w_value)

    # 1) f32 compute path: tight check against the module semantics.
    out_f32 = self_attention_v1(x, w_query, w_key, w_value,
                                compute_dtype=jnp.float32)
    out_f32 = jax.block_until_ready(out_f32)
    assert out_f32.shape == (T, d_out)
    assert jnp.allclose(out_f32, ref, atol=2e-4, rtol=2e-4), (out_f32, ref)

    # 2) default bf16-MXU path: compare against the reference fed the same
    #    bf16-quantized inputs (accounts for input quantization only).
    bf = lambda a: a.astype(jnp.bfloat16).astype(jnp.float32)
    ref_bf16_in = self_attention_v1_ref(bf(x), bf(w_query), bf(w_key), bf(w_value))
    out_bf16 = self_attention_v1(x, w_query, w_key, w_value)
    out_bf16 = jax.block_until_ready(out_bf16)
    assert out_bf16.shape == (T, d_out)
    assert jnp.allclose(out_bf16, ref_bf16_in, atol=5e-2, rtol=5e-2), (
        out_bf16, ref_bf16_in)

    print("KERNEL_OK")
</pallas_src>

<mosaic_0001>
module attributes {stable_mosaic.version = 11 : i64} {
  func.func @kernel(%arg0: i32, %arg1: memref<8x128xf32, #tpu.memory_space<vmem>>, %arg2: memref<8x128xf32, #tpu.memory_space<vmem>>, %arg3: memref<128x128xf32, #tpu.memory_space<vmem>>, %arg4: memref<128x128xf32, #tpu.memory_space<vmem>>, %arg5: memref<128x128xf32, #tpu.memory_space<vmem>>, %arg6: memref<8x128xf32, #tpu.memory_space<vmem>>) attributes {dimension_semantics = [#tpu.dimension_semantics<parallel>], iteration_bounds = array<i64: 1>, scalar_prefetch = 0 : i64, scratch_operands = 0 : i64, tpu.core_type = #tpu.core_type<tc>, window_params = [{transform_indices = @transform_0, window_bounds = array<i64: 8, 128>}, {pipeline_mode = #tpu.pipeline_mode<synchronous>, transform_indices = @transform_1, window_bounds = array<i64: 8, 128>}, {pipeline_mode = #tpu.pipeline_mode<synchronous>, transform_indices = @transform_2, window_bounds = array<i64: 128, 128>}, {pipeline_mode = #tpu.pipeline_mode<synchronous>, transform_indices = @transform_3, window_bounds = array<i64: 128, 128>}, {pipeline_mode = #tpu.pipeline_mode<synchronous>, transform_indices = @transform_4, window_bounds = array<i64: 128, 128>}, {transform_indices = @transform_5, window_bounds = array<i64: 8, 128>}]} {
    %c0 = arith.constant 0 : index
    %c0_0 = arith.constant 0 : index
    %0 = vector.load %arg1[%c0, %c0_0] : memref<8x128xf32, #tpu.memory_space<vmem>>, vector<8x128xf32>
    %c0_1 = arith.constant 0 : index
    %c0_2 = arith.constant 0 : index
    %1 = vector.load %arg3[%c0_1, %c0_2] : memref<128x128xf32, #tpu.memory_space<vmem>>, vector<128x128xf32>
    %cst = arith.constant dense<0.000000e+00> : vector<8x128xf32>
    %2 = tpu.matmul %0, %1, %cst {dimension_numbers = #tpu.dot_dimension_numbers<[1], [0], [0], [1], [0, 0, 1, 1], [], []>} : vector<8x128xf32>, vector<128x128xf32>, vector<8x128xf32> -> vector<8x128xf32>
    %c0_3 = arith.constant 0 : index
    %c0_4 = arith.constant 0 : index
    %3 = vector.load %arg2[%c0_3, %c0_4] : memref<8x128xf32, #tpu.memory_space<vmem>>, vector<8x128xf32>
    %c0_5 = arith.constant 0 : index
    %c0_6 = arith.constant 0 : index
    %4 = vector.load %arg4[%c0_5, %c0_6] : memref<128x128xf32, #tpu.memory_space<vmem>>, vector<128x128xf32>
    %cst_7 = arith.constant dense<0.000000e+00> : vector<8x128xf32>
    %5 = tpu.matmul %3, %4, %cst_7 {dimension_numbers = #tpu.dot_dimension_numbers<[1], [0], [0], [1], [0, 0, 1, 1], [], []>} : vector<8x128xf32>, vector<128x128xf32>, vector<8x128xf32> -> vector<8x128xf32>
    %c0_8 = arith.constant 0 : index
    %c0_9 = arith.constant 0 : index
    %6 = vector.load %arg2[%c0_8, %c0_9] : memref<8x128xf32, #tpu.memory_space<vmem>>, vector<8x128xf32>
    %c0_10 = arith.constant 0 : index
    %c0_11 = arith.constant 0 : index
    %7 = vector.load %arg5[%c0_10, %c0_11] : memref<128x128xf32, #tpu.memory_space<vmem>>, vector<128x128xf32>
    %cst_12 = arith.constant dense<0.000000e+00> : vector<8x128xf32>
    %8 = tpu.matmul %6, %7, %cst_12 {dimension_numbers = #tpu.dot_dimension_numbers<[1], [0], [0], [1], [0, 0, 1, 1], [], []>} : vector<8x128xf32>, vector<128x128xf32>, vector<8x128xf32> -> vector<8x128xf32>
    %cst_13 = arith.constant 0.707106769 : f32
    %9 = vector.broadcast %cst_13 : f32 to vector<8x128xf32>
    %10 = arith.mulf %2, %9 : vector<8x128xf32>
    %cst_14 = arith.constant dense<0.000000e+00> : vector<8x8xf32>
    %11 = tpu.matmul %10, %5, %cst_14 {dimension_numbers = #tpu.dot_dimension_numbers<[1], [1], [0], [0], [0, 0, 1, 0], [], []>} : vector<8x128xf32>, vector<8x128xf32>, vector<8x8xf32> -> vector<8x8xf32>
    %12 = tpu.iota {dimensions = array<i32: 1>} : vector<8x8xi32>
    %c6_i32 = arith.constant 6 : i32
    %13 = vector.broadcast %c6_i32 : i32 to vector<8x8xi32>
    %14 = arith.cmpi slt, %12, %13 : vector<8x8xi32>
    %cst_15 = arith.constant 0xFF800000 : f32
    %15 = vector.broadcast %cst_15 : f32 to vector<8x8xf32>
    %16 = arith.select %14, %11, %15 : vector<8x8xi1>, vector<8x8xf32>
    %cst_16 = arith.constant dense<0xFF800000> : vector<8xf32>
    %17 = vector.multi_reduction <maximumf>, %16, %cst_16 [1] : vector<8x8xf32> to vector<8xf32>
    %18 = vector.shape_cast %17 : vector<8xf32> to vector<8x1xf32>
    %19 = vector.broadcast %18 : vector<8x1xf32> to vector<8x8xf32>
    %20 = arith.subf %16, %19 : vector<8x8xf32>
    %21 = math.exp %20 : vector<8x8xf32>
    %cst_17 = arith.constant dense<0.000000e+00> : vector<8xf32>
    %22 = vector.multi_reduction <add>, %21, %cst_17 [1] : vector<8x8xf32> to vector<8xf32>
    %23 = vector.shape_cast %22 : vector<8xf32> to vector<8x1xf32>
    %24 = tpu.reciprocal %23 : vector<8x1xf32> -> vector<8x1xf32>
    %25 = vector.broadcast %24 : vector<8x1xf32> to vector<8x8xf32>
    %26 = arith.mulf %21, %25 : vector<8x8xf32>
    %cst_18 = arith.constant dense<0.000000e+00> : vector<8x128xf32>
    %27 = tpu.matmul %26, %8, %cst_18 {dimension_numbers = #tpu.dot_dimension_numbers<[1], [0], [0], [1], [0, 0, 1, 1], [], []>} : vector<8x8xf32>, vector<8x128xf32>, vector<8x128xf32> -> vector<8x128xf32>
    %c0_19 = arith.constant 0 : index
    %c0_20 = arith.constant 0 : index
    %28 = vector.load %arg6[%c0_19, %c0_20] : memref<8x128xf32, #tpu.memory_space<vmem>>, vector<8x128xf32>
    tpu.vector_store %arg6[%c0_19, %c0_20], %27 {strides = array<i32>} : memref<8x128xf32, #tpu.memory_space<vmem>>, vector<8x128xf32>,
    return
  }
  func.func @transform_0(%arg0: i32) -> (i32, i32) {
    %c0_i32 = arith.constant 0 : i32
    %c0_i32_0 = arith.constant 0 : i32
    return %arg0, %c0_i32 : i32, i32
  }
  func.func @transform_1(%arg0: i32) -> (i32, i32) {
    %c0_i32 = arith.constant 0 : i32
    %c0_i32_0 = arith.constant 0 : i32
    %c0_i32_1 = arith.constant 0 : i32
    return %c0_i32, %c0_i32_0 : i32, i32
  }
  func.func @transform_2(%arg0: i32) -> (i32, i32) {
    %c0_i32 = arith.constant 0 : i32
    %c0_i32_0 = arith.constant 0 : i32
    %c0_i32_1 = arith.constant 0 : i32
    return %c0_i32, %c0_i32_0 : i32, i32
  }
  func.func @transform_3(%arg0: i32) -> (i32, i32) {
    %c0_i32 = arith.constant 0 : i32
    %c0_i32_0 = arith.constant 0 : i32
    %c0_i32_1 = arith.constant 0 : i32
    return %c0_i32, %c0_i32_0 : i32, i32
  }
  func.func @transform_4(%arg0: i32) -> (i32, i32) {
    %c0_i32 = arith.constant 0 : i32
    %c0_i32_0 = arith.constant 0 : i32
    %c0_i32_1 = arith.constant 0 : i32
    return %c0_i32, %c0_i32_0 : i32, i32
  }
  func.func @transform_5(%arg0: i32) -> (i32, i32) {
    %c0_i32 = arith.constant 0 : i32
    %c0_i32_0 = arith.constant 0 : i32
    return %arg0, %c0_i32 : i32, i32
  }
}

</mosaic_0001>

<bundles_post_ra>
// kernel: tpu_custom_call.1
= control target key start
LH: loop header
LB: loop body
LE: loop exit
PB: predicated region body
PF: predicated region fallthrough
CT: control target
= control target key end

     0   :  { %10 = vsyncpa [#allocation3], 0  ;;  %s1082_s0 = inlined_call_operand.hbm [shape: f32[8,128], index: 0, kind: input, shape index: {}]   ;;  %s1083_s1 = inlined_call_operand.hbm [shape: f32[8,128], index: 1, kind: input, shape index: {}]   ;;  %s1084_s2 = inlined_call_operand.hbm [shape: f32[128,128], index: 2, kind: input, shape index: {}]   ;;  %s1085_s3 = inlined_call_operand.hbm [shape: f32[128,128], index: 3, kind: input, shape index: {}]   ;;  %s1086_s4 = inlined_call_operand.hbm [shape: f32[128,128], index: 4, kind: input, shape index: {}]   ;;  %s1087_s5 = inlined_call_operand.hbm [shape: f32[8,128], index: 5, kind: output, shape index: {}]  }
   0x1   :  { %11 = vsyncpa [#allocation6], 0 }
   0x2   :  { %12 = vsyncpa [#allocation9], 0 }
   0x3   :  { %13 = vsyncpa [#allocation4], 0  ;;  %s921_s18 = smov [#allocation5]   ;;  %s781_s22 = scalar_lea.hbm %s1083_s1, 128 }
   0x4   :  { %s30_s19 = sshll.u32 %s921_s18, 4  ;;  %p782_p0 = scmp.ne.s32.totalorder %s1083_s1, %s781_s22  ;;  %s31_s19 = int_to_ptr.vmem [resolvable:$true] %s30_s19 }
   0x5   :  { %p785_p1 = scmp.lt.u32.totalorder %s781_s22, %s1083_s1 }
   0x7   :  { %p787_p2 = pnand %p785_p1, %p782_p0 }
   0x9   :  { %790 = shalt.err (!%p787_p2)
}
   0xa   :  { %s791_s27 = scalar_lea.vmem %s31_s19, 128  ;;  %p796_p4 = scmp.lt.s32.totalorder %s31_s19, %s31_s19 }
   0xb   :  { %p792_p3 = scmp.ne.s32.totalorder %s31_s19, %s791_s27  ;;  %p797_p5 = scmp.lt.s32.totalorder %s791_s27, %s791_s27 }
   0xd   :  { %p798_p6 = por %p797_p5, %p796_p4 }
   0xf   :  { %p799_p7 = pnand %p798_p6, %p792_p3 }
  0x11   :  { %802 = shalt.err (!%p799_p7)
}
  0x12   :  { %33 = dma.hbm_to_vmem [thread:$0]  %s1083_s1, 128, %s31_s19, [#allocation6]  }
  0x13   :  { %s922_s30 = smov [#allocation8]   ;;  %s923_s7 = smov [#allocation2]  }
  0x14   :  { %s51_s6 = sshll.u32 %s922_s30, 4  ;;  %s20_s8 = sshll.u32 %s923_s7, 4  ;;  %s52_s6 = int_to_ptr.vmem [resolvable:$true] %s51_s6  ;;  %s21_s8 = int_to_ptr.vmem [resolvable:$true] %s20_s8 }
  0x15   :  { %s803_s11 = scalar_lea.hbm %s1085_s3, 2048 }
  0x16   :  { %p804_p8 = scmp.ne.s32.totalorder %s1085_s3, %s803_s11  ;;  %p807_p9 = scmp.lt.u32.totalorder %s803_s11, %s1085_s3 }
  0x18   :  { %p809_p10 = pnand %p807_p9, %p804_p8 }
  0x1a   :  { %812 = shalt.err (!%p809_p10)
}
  0x1b   :  { %s813_s1 = scalar_lea.vmem %s52_s6, 2048  ;;  %p818_p12 = scmp.lt.s32.totalorder %s52_s6, %s52_s6 }
  0x1c   :  { %p814_p11 = scmp.ne.s32.totalorder %s52_s6, %s813_s1  ;;  %p819_p13 = scmp.lt.s32.totalorder %s813_s1, %s813_s1 }
  0x1e   :  { %p820_p0 = por %p819_p13, %p818_p12 }
  0x20   :  { %p821_p1 = pnand %p820_p0, %p814_p11 }
  0x22   :  { %824 = shalt.err (!%p821_p1)
}
  0x23   :  { %s924_s16 = smov 128   ;;  %s925_s17 = smov 8  }
  0x24   :  { %57 = dma.hbm_to_vmem [thread:$0]  %s1085_s3, 2048, %s52_s6, [#allocation9], %s924_s16, %s924_s16, %s925_s17  }
  0x25   :  { %s825_s22 = scalar_lea.hbm %s1082_s0, 128 }
  0x26   :  { %p826_p2 = scmp.ne.s32.totalorder %s1082_s0, %s825_s22  ;;  %p829_p3 = scmp.lt.u32.totalorder %s825_s22, %s1082_s0 }
  0x28   :  { %p831_p4 = pnand %p829_p3, %p826_p2 }
  0x2a   :  { %834 = shalt.err (!%p831_p4)
}
  0x2b   :  { %s835_s27 = scalar_lea.vmem %s21_s8, 128  ;;  %p840_p6 = scmp.lt.s32.totalorder %s21_s8, %s21_s8 }
  0x2c   :  { %p836_p5 = scmp.ne.s32.totalorder %s21_s8, %s835_s27  ;;  %p841_p7 = scmp.lt.s32.totalorder %s835_s27, %s835_s27 }
  0x2e   :  { %p842_p8 = por %p841_p7, %p840_p6 }
  0x30   :  { %p843_p9 = pnand %p842_p8, %p836_p5 }
  0x32   :  { %846 = shalt.err (!%p843_p9)
}
  0x33   :  { %23 = dma.hbm_to_vmem [thread:$0]  %s1082_s0, 128, %s21_s8, [#allocation3]  }
  0x34   :  { %s926_s29 = smov [#allocation7]   ;;  %s927_s6 = smov [#allocation10]  }
  0x35   :  { %s39_s30 = sshll.u32 %s926_s29, 4  ;;  %s63_s7 = sshll.u32 %s927_s6, 4  ;;  %s40_s30 = int_to_ptr.vmem [resolvable:$true] %s39_s30  ;;  %s64_s7 = int_to_ptr.vmem [resolvable:$true] %s63_s7 }
  0x36   :  { %s847_s11 = scalar_lea.hbm %s1084_s2, 2048 }
  0x37   :  { %p848_p10 = scmp.ne.s32.totalorder %s1084_s2, %s847_s11  ;;  %p851_p11 = scmp.lt.u32.totalorder %s847_s11, %s1084_s2 }
  0x39   :  { %p853_p12 = pnand %p851_p11, %p848_p10 }
  0x3b   :  { %856 = shalt.err (!%p853_p12)
}
  0x3c   :  { %s857_s0 = scalar_lea.vmem %s40_s30, 2048  ;;  %p862_p0 = scmp.lt.s32.totalorder %s40_s30, %s40_s30 }
  0x3d   :  { %p858_p13 = scmp.ne.s32.totalorder %s40_s30, %s857_s0  ;;  %p863_p1 = scmp.lt.s32.totalorder %s857_s0, %s857_s0 }
  0x3f   :  { %p864_p2 = por %p863_p1, %p862_p0 }
  0x41   :  { %p865_p3 = pnand %p864_p2, %p858_p13 }
  0x43   :  { %868 = shalt.err (!%p865_p3)
}
  0x44   :  { %45 = dma.hbm_to_vmem [thread:$0]  %s1084_s2, 2048, %s40_s30, [#allocation6], %s924_s16, %s924_s16, %s925_s17  }
  0x45   :  { %s869_s20 = scalar_lea.hbm %s1086_s4, 2048 }
  0x46   :  { %p870_p4 = scmp.ne.s32.totalorder %s1086_s4, %s869_s20  ;;  %p873_p5 = scmp.lt.u32.totalorder %s869_s20, %s1086_s4 }
  0x48   :  { %p875_p6 = pnand %p873_p5, %p870_p4 }
  0x4a   :  { %878 = shalt.err (!%p875_p6)
}
  0x4b   :  { %s879_s25 = scalar_lea.vmem %s64_s7, 2048  ;;  %p884_p8 = scmp.lt.s32.totalorder %s64_s7, %s64_s7 }
  0x4c   :  { %p880_p7 = scmp.ne.s32.totalorder %s64_s7, %s879_s25  ;;  %p885_p9 = scmp.lt.s32.totalorder %s879_s25, %s879_s25 }
  0x4e   :  { %p886_p10 = por %p885_p9, %p884_p8 }
  0x50   :  { %p887_p11 = pnand %p886_p10, %p880_p7 }
  0x52   :  { %890 = shalt.err (!%p887_p11)
}
  0x53   :  { %69 = dma.hbm_to_vmem [thread:$0]  %s1086_s4, 2048, %s64_s7, [#allocation9], %s924_s16, %s924_s16, %s925_s17  }
  0x54   :  { %913 = dma.done.wait [#allocation3], 128  }
  0x55   :  { %914 = vsyncadd [#allocation3], 4294967168 }
  0x56   :  { %915 = dma.done.wait [#allocation6], 2176  }
  0x57   :  { %916 = vsyncadd [#allocation6], 4294965120 }
  0x58   :  { %917 = dma.done.wait [#allocation9], 4096  }
  0x59   :  { %918 = vsyncadd [#allocation9], 4294963200  ;;  %v928_v0 = vmov 0.0|0.0   ;;  %vm929_vm0 = vmmov 0   ;;  %v930_v1 = vmov 0.0   ;;  %v173_v2 = vld [vmem:[#allocation8] sm:$0xff] }
  0x5a   :  { %718 = vmatprep.subr.bf16.mxu1 %v928_v0  ;;  %694 = vmatprep.subr.bf16.mxu0 %v928_v0  ;;  %v174_v3 = vld [vmem:[#allocation8 + $0x8] sm:$0xff]  ;;  %v86_v4 = vld [vmem:[#allocation7] sm:$0xff]  ;;  %v175_v7 = vld [vmem:[#allocation8 + $0x10] sm:$0xff]  ;;  %vm420_vm2 = vcmask 64512   ;;  %s931_s4 = smov [#allocation11]  }
  0x5b   :  { %646 = vmatprep.mubr.msk.f32.mxu1 %vm929_vm0, %v930_v1  ;;  %611 = vmatprep.mubr.msk.f32.mxu0 %vm929_vm0, %v930_v1  ;;  %v719_v5 = vpack.c.bf16 %v174_v3, %v173_v2  ;;  %v87_v6 = vld [vmem:[#allocation7 + $0x8] sm:$0xff]  ;;  %v176_v8 = vld [vmem:[#allocation8 + $0x18] sm:$0xff]  ;;  %v88_v10 = vld [vmem:[#allocation7 + $0x10] sm:$0xff]  ;;  %s512_s16 = sshll.u32 %s931_s4, 4  ;;  %s513_s16 = int_to_ptr.vmem [resolvable:$true] %s512_s16 }
  0x5c   :  { %v695_v9 = vpack.c.bf16 %v87_v6, %v86_v4  ;;  %v89_v11 = vld [vmem:[#allocation7 + $0x18] sm:$0xff]  ;;  %v722_v12 = vpack.c.bf16 %v176_v8, %v175_v7  ;;  %v177_v14 = vld [vmem:[#allocation8 + $0x20] sm:$0xff]  ;;  %v178_v15 = vld [vmem:[#allocation8 + $0x28] sm:$0xff]  ;;  %s891_s17 = scalar_lea.vmem %s513_s16, 128  ;;  %p896_p13 = scmp.lt.s32.totalorder %s513_s16, %s513_s16 }
  0x5d   :  { %720 = vmatpush3.bf16.msra.mxu1 %v719_v5  ;;  %v698_v13 = vpack.c.bf16 %v89_v11, %v88_v10  ;;  %v90_v16 = vld [vmem:[#allocation7 + $0x20] sm:$0xff]  ;;  %v91_v17 = vld [vmem:[#allocation7 + $0x28] sm:$0xff]  ;;  %v725_v18 = vpack.c.bf16 %v178_v15, %v177_v14  ;;  %v179_v20 = vld [vmem:[#allocation8 + $0x30] sm:$0xff]  ;;  %p892_p12 = scmp.ne.s32.totalorder %s513_s16, %s891_s17  ;;  %p897_p0 = scmp.lt.s32.totalorder %s891_s17, %s891_s17 }
  0x5e   :  { %696 = vmatpush3.bf16.msra.mxu0 %v695_v9  ;;  %721 = vmatprep.subr.bf16.mxu1 %v928_v0  ;;  %v701_v19 = vpack.c.bf16 %v91_v17, %v90_v16  ;;  %v180_v21 = vld [vmem:[#allocation8 + $0x38] sm:$0xff]  ;;  %v92_v22 = vld [vmem:[#allocation7 + $0x30] sm:$0xff]  ;;  %v181_v26 = vld [vmem:[#allocation8 + $0x40] sm:$0xff] }
  0x5f   :  { %697 = vmatprep.subr.bf16.mxu0 %v928_v0  ;;  %v93_v23 = vld [vmem:[#allocation7 + $0x38] sm:$0xff]  ;;  %v728_v24 = vpack.c.bf16 %v180_v21, %v179_v20  ;;  %v182_v27 = vld [vmem:[#allocation8 + $0x48] sm:$0xff]  ;;  %v94_v28 = vld [vmem:[#allocation7 + $0x40] sm:$0xff]  ;;  %p898_p1 = por %p897_p0, %p896_p13 }
  0x60   :  { %v704_v25 = vpack.c.bf16 %v93_v23, %v92_v22  ;;  %v95_v29 = vld [vmem:[#allocation7 + $0x48] sm:$0xff]  ;;  %v731_v30 = vpack.c.bf16 %v182_v27, %v181_v26  ;;  %v183_v32 = vld [vmem:[#allocation8 + $0x50] sm:$0xff]  ;;  %v184_v33 = vld [vmem:[#allocation8 + $0x58] sm:$0xff] }
  0x61   :  { %723 = vmatpush3.bf16.msra.mxu1 %v722_v12  ;;  %v707_v31 = vpack.c.bf16 %v95_v29, %v94_v28  ;;  %v96_v34 = vld [vmem:[#allocation7 + $0x50] sm:$0xff]  ;;  %v97_v35 = vld [vmem:[#allocation7 + $0x58] sm:$0xff]  ;;  %v734_v36 = vpack.c.bf16 %v184_v33, %v183_v32  ;;  %v185_v38 = vld [vmem:[#allocation8 + $0x60] sm:$0xff]  ;;  %p899_p2 = pnand %p898_p1, %p892_p12 }
  0x62   :  { %699 = vmatpush3.bf16.msra.mxu0 %v698_v13  ;;  %724 = vmatprep.subr.bf16.mxu1 %v928_v0  ;;  %v710_v37 = vpack.c.bf16 %v97_v35, %v96_v34  ;;  %v186_v39 = vld [vmem:[#allocation8 + $0x68] sm:$0xff]  ;;  %v98_v40 = vld [vmem:[#allocation7 + $0x60] sm:$0xff]  ;;  %v187_v44 = vld [vmem:[#allocation8 + $0x70] sm:$0xff] }
  0x63   :  { %700 = vmatprep.subr.bf16.mxu0 %v928_v0  ;;  %v99_v41 = vld [vmem:[#allocation7 + $0x68] sm:$0xff]  ;;  %v737_v42 = vpack.c.bf16 %v186_v39, %v185_v38  ;;  %v188_v45 = vld [vmem:[#allocation8 + $0x78] sm:$0xff]  ;;  %v100_v46 = vld [vmem:[#allocation7 + $0x70] sm:$0xff] }
  0x64   :  { %v713_v43 = vpack.c.bf16 %v99_v41, %v98_v40  ;;  %v101_v47 = vld [vmem:[#allocation7 + $0x78] sm:$0xff]  ;;  %v740_v48 = vpack.c.bf16 %v188_v45, %v187_v44  ;;  %v85_v51 = vld [vmem:[#allocation2] sm:$0xff]  ;;  %v259_v57 = vld [vmem:[#allocation10] sm:$0xff] }
  0x65   :  { %726 = vmatpush3.bf16.msra.mxu1 %v725_v18  ;;  %v716_v49 = vpack.c.bf16 %v101_v47, %v100_v46  ;;  %v172_v50 = vld [vmem:[#allocation5] sm:$0xff]  ;;  %v260_v58 = vld [vmem:[#allocation10 + $0x8] sm:$0xff]  ;;  %v261_v59 = vld [vmem:[#allocation10 + $0x10] sm:$0xff]  ;;  %v416_v18 = vlaneseq }
  0x66   :  { %702 = vmatpush3.bf16.msra.mxu0 %v701_v19  ;;  %727 = vmatprep.subr.bf16.mxu1 %v928_v0  ;;  %v743_v60 = vpack.c.bf16 %v260_v58, %v259_v57  ;;  %v262_v61 = vld [vmem:[#allocation10 + $0x18] sm:$0xff]  ;;  %v263_v63 = vld [vmem:[#allocation10 + $0x20] sm:$0xff]  ;;  %v264_v2 = vld [vmem:[#allocation10 + $0x28] sm:$0xff] }
  0x67   :  { %703 = vmatprep.subr.bf16.mxu0 %v928_v0  ;;  %v746_v62 = vpack.c.bf16 %v262_v61, %v261_v59  ;;  %v749_v3 = vpack.c.bf16 %v264_v2, %v263_v63  ;;  %v265_v4 = vld [vmem:[#allocation10 + $0x30] sm:$0xff]  ;;  %v266_v5 = vld [vmem:[#allocation10 + $0x38] sm:$0xff]  ;;  %v268_v7 = vld [vmem:[#allocation10 + $0x48] sm:$0xff]  ;;  %v417_v19 = vand.u32 127, %v416_v18 }
  0x68   :  { %v752_v6 = vpack.c.bf16 %v266_v5, %v265_v4  ;;  %v269_v9 = vld [vmem:[#allocation10 + $0x50] sm:$0xff]  ;;  %v270_v10 = vld [vmem:[#allocation10 + $0x58] sm:$0xff]  ;;  %v271_v12 = vld [vmem:[#allocation10 + $0x60] sm:$0xff] }
  0x69   :  { %729 = vmatpush3.bf16.msra.mxu1 %v728_v24  ;;  %v758_v11 = vpack.c.bf16 %v270_v10, %v269_v9  ;;  %v272_v13 = vld [vmem:[#allocation10 + $0x68] sm:$0xff]  ;;  %v273_v15 = vld [vmem:[#allocation10 + $0x70] sm:$0xff]  ;;  %v274_v16 = vld [vmem:[#allocation10 + $0x78] sm:$0xff]  ;;  %vm418_vm1 = vcmp.lt.s32.totalorder %v417_v19, 6 }
  0x6a   :  { %705 = vmatpush3.bf16.msra.mxu0 %v704_v25  ;;  %730 = vmatprep.subr.bf16.mxu1 %v928_v0  ;;  %v761_v14 = vpack.c.bf16 %v272_v13, %v271_v12  ;;  %v764_v17 = vpack.c.bf16 %v274_v16, %v273_v15 }
  0x6b   :  { %706 = vmatprep.subr.bf16.mxu0 %v928_v0 }
  0x6d   :  { %732 = vmatpush3.bf16.msra.mxu1 %v731_v30 }
  0x6e   :  { %708 = vmatpush3.bf16.msra.mxu0 %v707_v31  ;;  %733 = vmatprep.subr.bf16.mxu1 %v928_v0 }
  0x6f   :  { %709 = vmatprep.subr.bf16.mxu0 %v928_v0 }
  0x71   :  { %735 = vmatpush3.bf16.msra.mxu1 %v734_v36 }
  0x72   :  { %711 = vmatpush3.bf16.msra.mxu0 %v710_v37  ;;  %736 = vmatprep.subr.bf16.mxu1 %v928_v0 }
  0x73   :  { %712 = vmatprep.subr.bf16.mxu0 %v928_v0 }
  0x75   :  { %738 = vmatpush3.bf16.msra.mxu1 %v737_v42 }
  0x76   :  { %714 = vmatpush3.bf16.msra.mxu0 %v713_v43  ;;  %739 = vmatprep.subr.bf16.mxu1 %v928_v0 }
  0x77   :  { %715 = vmatprep.subr.bf16.mxu0 %v928_v0 }
  0x79   :  { %741 = vmatpush3.bf16.msra.mxu1 %v740_v48 }
  0x7a   :  { %717 = vmatpush3.bf16.msra.mxu0 %v716_v49  ;;  %684 = vmatprep.subr.mxu1 %v930_v1 }
  0x7b   :  { %742 = vmatprep.subr.bf16.mxu0 %v928_v0 }
  0x7c   :  { %647 = vmatmul.mubr.f32.vlgmr.msra.gmra.mrb[0].mxu1 %v172_v50 }
  0x7d   :  { %612 = vmatmul.mubr.f32.vlgmr.msra.gmra.mrb[0].mxu0 %v85_v51  ;;  %686 = vmatprep.mubr.msk.f32.mxu1 %vm929_vm0, %v930_v1 }
  0x7e   :  { %681 = vmatprep.mubr.msk.f32.mxu0 %vm929_vm0, %v930_v1  ;;  %744 = vmatpush3.bf16.msra.mxu0 %v743_v60 }
  0x7f   :  { %745 = vmatprep.subr.bf16.mxu0 %v928_v0 }
  0x82   :  { %747 = vmatpush3.bf16.msra.mxu0 %v746_v62 }
  0x83   :  { %748 = vmatprep.subr.bf16.mxu0 %v928_v0 }
  0x86   :  { %750 = vmatpush3.bf16.msra.mxu0 %v749_v3 }
  0x87   :  { %751 = vmatprep.subr.bf16.mxu0 %v928_v0 }
  0x8a   :  { %753 = vmatpush3.bf16.msra.mxu0 %v752_v6 }
  0x8b   :  { %754 = vmatprep.subr.bf16.mxu0 %v928_v0 }
 0x14f   :  { %v255_v52 = vpop.f32.mrb[0].mxu1 }
 0x150   :  { %v168_v53 = vpop.f32.mrb[0].mxu0  ;;  %v648_v54 = vpop.f32.mrb[1].mxu1  ;;  %685 = vmatpush3.xpose.msra.mxu1 %v255_v52 }
 0x151   :  { %v345_v55 = vmul.f32 0.70710677, %v168_v53  ;;  %v613_v56 = vpop.f32.mrb[1].mxu0  ;;  %689 = vmatprep.subr.mxu1 %v930_v1 }
 0x153   :  { %687 = vmatmul.mubr.f32.vlgmr.msra.gmra.mrb[2].mxu1 %v345_v55 }
 0x154   :  { %691 = vmatprep.mubr.msk.f32.mxu1 %vm929_vm0, %v930_v1  ;;  %v267_v1 = vld [vmem:[#allocation10 + $0x40] sm:$0xff] }
 0x155   :  { %v755_v8 = vpack.c.bf16 %v268_v7, %v267_v1 }
 0x157   :  { %756 = vmatpush3.bf16.msra.mxu0 %v755_v8 }
 0x158   :  { %757 = vmatprep.subr.bf16.mxu0 %v928_v0 }
 0x15b   :  { %759 = vmatpush3.bf16.msra.mxu0 %v758_v11 }
 0x15c   :  { %760 = vmatprep.subr.bf16.mxu0 %v928_v0 }
 0x15f   :  { %762 = vmatpush3.bf16.msra.mxu0 %v761_v14 }
 0x160   :  { %763 = vmatprep.subr.bf16.mxu0 %v928_v0 }
 0x163   :  { %765 = vmatpush3.bf16.msra.mxu0 %v764_v17 }
 0x166   :  { %682 = vmatmul.mubr.f32.vlgmr.msra.gmra.mrb[2].mxu0 %v172_v50 }
 0x226   :  { %v412_v20 = vpop.f32.mrb[2].mxu1 }
 0x227   :  { %v419_v21 = vsel %vm418_vm1, %v412_v20, -inf  ;;  %v688_v22 = vpop.f32.mrb[3].mxu1 }
 0x228   :  { %v421_v23 = vsel %vm420_vm2, %v419_v21, -inf }
 0x229   :  { %422 = vmax.xlane.f32.xlu0 %v421_v23 }
 0x239   :  { %v341_v0 = vpop.f32.mrb[2].mxu0 }
 0x23a   :  { %v683_v29 = vpop.f32.mrb[3].mxu0  ;;  %690 = vmatpush3.msra.mxu1 %v341_v0 }
 0x2b6   :  { %v423_v24 = vpop.xlane.xlu0 %422 }
 0x2b7   :  { %v424_v25 = vsub.f32 %v419_v21, %v423_v24 }
 0x2b9   :  { %v425_v26 = vmul.f32 1.442695, %v424_v25 }
 0x2bb   :  { %777 = vpow2.f32 %v425_v26 }
 0x2c5   :  { %v778_v27 = vpop.eup %777 }
 0x2c6   :  { %v427_v28 = vsel %vm420_vm2, %v778_v27, 0.0 }
 0x2c7   :  { %428 = vadd.xlane.f32.xlu0 %v427_v28 }
 0x354   :  { %v429_v30 = vpop.xlane.xlu0 %428 }
 0x355   :  { %779 = vrcp.f32 %v429_v30 }
 0x35f   :  { %v780_v31 = vpop.eup %779 }
 0x360   :  { %v431_v32 = vmul.f32 %v780_v31, %v778_v27 }
 0x362   :  { %692 = vmatmul.mubr.msk.f32.vlgmr.msra.gmra.mrb[4].mxu1 %vm420_vm2, %v431_v32 }
 0x435   :  { %v501_v33 = vpop.f32.mrb[4].mxu1 }
 0x436   :  { %505 = vst [vmem:[#allocation11] sm:$0xff] %v501_v33  ;;  %v693_v34 = vpop.f32.mrb[5].mxu1 }
 0x437   :  { %902 = shalt.err (!%p899_p2)
}
 0x438   :  { %s903_s28 = scalar_lea.hbm %s1087_s5, 128 }
 0x439   :  { %p904_p3 = scmp.ne.s32.totalorder %s1087_s5, %s903_s28  ;;  %p907_p4 = scmp.lt.u32.totalorder %s903_s28, %s1087_s5 }
 0x43b   :  { %p909_p5 = pnand %p907_p4, %p904_p3 }
 0x43d   :  { %912 = shalt.err (!%p909_p5)
}
 0x43e   :  { %515 = dma.vmem_to_hbm [thread:$0]  %s513_s16, 128, %s1087_s5, [#allocation4]  }
 0x43f   :  { %919 = dma.done.wait [#allocation4], 128  }
 0x440   :  { %920 = vsyncadd [#allocation4], 4294967168 }
 0x441   :  { %519 = vsyncpa [#allocation3], 1 }
 0x442   :  { %520 = vsyncpa [#allocation6], 1 }
 0x443   :  { %521 = vsyncpa [#allocation9], 1 }
 0x444   :  { %522 = vsyncpa [#allocation4], 1 }

</bundles_post_ra>
